<compile_context>
chip_gen: v7x
topology: tpu7x:2x2x1
jax: 0.10.0
libtpu: 0.0.40
codegen_flags: <defaults>
</compile_context>

<pallas_src>
import functools

import jax
import jax.numpy as jnp
from jax.experimental import pallas as pl
from jax.experimental.pallas import tpu as pltpu

C_IN, C_MID1, C_MID2, C_OUT = 256, 256, 128, 1


def _netd_pixel_kernel(x_ref, w1_ref, w2_ref, w3_ref, o_ref):
    # x_ref : (256, tm)  f32  channels x pixel tile (NCHW-native slab)
    # w1_ref: (256, 256) bf16 conv1 weight, PyTorch (out, in) layout
    # w2_ref: (128, 256) bf16 conv2 weight, PyTorch (out, in) layout
    # w3_ref: (128, 1)   f32  conv3 weight as a column
    # o_ref : (1, tm)    f32  lane-dense sigmoid output slab
    x_bf16 = x_ref[...].astype(jnp.bfloat16)

    # conv1 + ReLU : (256,256) @ (256,tm) -> (256,tm), bf16 MXU, f32 acc.
    h1 = jnp.dot(w1_ref[...], x_bf16, preferred_element_type=jnp.float32)
    h1 = jnp.maximum(h1, 0.0).astype(jnp.bfloat16)

    # conv2 + ReLU : (128,256) @ (256,tm) -> (128,tm), bf16 MXU, f32 acc.
    h2 = jnp.dot(w2_ref[...], h1, preferred_element_type=jnp.float32)
    h2 = jnp.maximum(h2, 0.0)

    # conv3 (128 -> 1): VPU broadcast-multiply by the w3 column + sublane
    # (XLU) reduction — avoids a degenerate 1-output-row MXU matmul and sits
    # in otherwise-idle VPU/XLU slots.
    logits = jnp.sum(h2 * w3_ref[...], axis=0, keepdims=True)   # (1, tm)

    o_ref[...] = jax.nn.sigmoid(logits).astype(o_ref.dtype)


@functools.partial(jax.jit, static_argnames=("tm",))
def netd_pixel_forward(x_nchw, w1, w2, w3, *, tm=2048):
    """Forward pass of netD_pixel (context=False path).

    Args:
      x_nchw: (N, 256, H, W) float32 input (PyTorch NCHW convention).
      w1, w2, w3: conv weights in PyTorch layout (out, in, 1, 1).
      tm: pixel tile size (lanes per grid step); clamped to the image size.
    Returns:
      (N, 1, H, W) float32 sigmoid output.
    """
    n, c, h, w = x_nchw.shape
    assert c == C_IN
    hw = h * w

    # Clamp the pixel tile so small feature maps don't over-tile; keep it a
    # multiple of 128 (lane width), at least one full vreg row of lanes.
    tm = max(128, min(tm, pl.cdiv(hw, 128) * 128))

    # NCHW stays put: just merge the spatial axes (free reshape, no transpose).
    x_flat = x_nchw.reshape(n, c, hw)

    # PyTorch (out, in, 1, 1) -> (out, in) LHS matrices; tiny one-off casts.
    w1m = w1[:, :, 0, 0].astype(jnp.bfloat16)                  # (256, 256)
    w2m = w2[:, :, 0, 0].astype(jnp.bfloat16)                  # (128, 256)
    w3m = jnp.transpose(w3[:, :, 0, 0]).astype(jnp.float32)    # (128, 1)

    grid = (n, pl.cdiv(hw, tm))   # ragged tail handled by masked edge writes

    out_flat = pl.pallas_call(
        _netd_pixel_kernel,
        out_shape=jax.ShapeDtypeStruct((n, C_OUT, hw), jnp.float32),
        grid_spec=pltpu.PrefetchScalarGridSpec(
            num_scalar_prefetch=0,
            grid=grid,
            in_specs=[
                # batch dim squeezed; pixels tiled on the lane axis
                pl.BlockSpec((None, C_IN, tm), lambda b, i: (b, 0, i)),
                # weights resident across the whole grid (constant index map)
                pl.BlockSpec((C_MID1, C_IN), lambda b, i: (0, 0)),
                pl.BlockSpec((C_MID2, C_MID1), lambda b, i: (0, 0)),
                pl.BlockSpec((C_MID2, C_OUT), lambda b, i: (0, 0)),
            ],
            out_specs=pl.BlockSpec((None, C_OUT, tm), lambda b, i: (b, 0, i)),
        ),
        compiler_params=pltpu.CompilerParams(
            dimension_semantics=("parallel", "parallel")),
    )(x_flat, w1m, w2m, w3m)

    # (N, 1, H*W) -> (N, 1, H, W): pure reshape, no data movement.
    return out_flat.reshape(n, C_OUT, h, w)

    # TODO(synk): context=True branch (global avg-pool of the conv2 feature)
    # is not exercised by the default forward; it would be a per-channel mean
    # over the pixel axis accumulated across pixel-tile grid steps.


def _reference_forward(x_nchw, w1, w2, w3):
    """Pure-JAX f32 reference: 1x1 convs as einsums, same NCHW semantics."""
    h1 = jax.nn.relu(jnp.einsum("nchw,oc->nohw", x_nchw, w1[:, :, 0, 0]))
    h2 = jax.nn.relu(jnp.einsum("nchw,oc->nohw", h1, w2[:, :, 0, 0]))
    return jax.nn.sigmoid(jnp.einsum("nchw,oc->nohw", h2, w3[:, :, 0, 0]))


if __name__ == "__main__":
    key = jax.random.PRNGKey(0)
    k_x, k1, k2, k3 = jax.random.split(key, 4)

    # Small but module-consistent shapes: input channels are fixed at 256 by
    # the module; small batch / spatial extent for the smoke test.
    N, H, W = 2, 16, 16
    x = jax.random.normal(k_x, (N, C_IN, H, W), dtype=jnp.float32)

    # normal_init(m, 0, 0.01): N(0, 0.01) weights, PyTorch layout (out,in,1,1).
    w1 = 0.01 * jax.random.normal(k1, (C_MID1, C_IN, 1, 1), dtype=jnp.float32)
    w2 = 0.01 * jax.random.normal(k2, (C_MID2, C_MID1, 1, 1), dtype=jnp.float32)
    w3 = 0.01 * jax.random.normal(k3, (C_OUT, C_MID2, 1, 1), dtype=jnp.float32)

    out = netd_pixel_forward(x, w1, w2, w3)
    jax.block_until_ready(out)

    ref = _reference_forward(x, w1, w2, w3)
    assert out.shape == (N, 1, H, W), out.shape
    # bf16 MXU operands vs f32 reference: loosened tolerance.
    assert jnp.allclose(out, ref, atol=5e-3, rtol=1e-2), "mismatch vs reference"

    print("KERNEL_OK")
</pallas_src>

<mosaic_0001>
module attributes {stable_mosaic.version = 11 : i64} {
  func.func @_netd_pixel_kernel(%arg0: i32, %arg1: i32, %arg2: memref<1x256x256xf32, #tpu.memory_space<vmem>>, %arg3: memref<256x256xbf16, #tpu.memory_space<vmem>>, %arg4: memref<128x256xbf16, #tpu.memory_space<vmem>>, %arg5: memref<128x1xf32, #tpu.memory_space<vmem>>, %arg6: memref<1x1x256xf32, #tpu.memory_space<vmem>>) attributes {dimension_semantics = [#tpu.dimension_semantics<parallel>, #tpu.dimension_semantics<parallel>], iteration_bounds = array<i64: 2, 1>, scalar_prefetch = 0 : i64, scratch_operands = 0 : i64, tpu.core_type = #tpu.core_type<tc>, window_params = [{transform_indices = @transform_0, window_bounds = array<i64: 1, 256, 256>}, {pipeline_mode = #tpu.pipeline_mode<synchronous>, transform_indices = @transform_1, window_bounds = array<i64: 256, 256>}, {pipeline_mode = #tpu.pipeline_mode<synchronous>, transform_indices = @transform_2, window_bounds = array<i64: 128, 256>}, {pipeline_mode = #tpu.pipeline_mode<synchronous>, transform_indices = @transform_3, window_bounds = array<i64: 128, 1>}, {transform_indices = @transform_4, window_bounds = array<i64: 1, 1, 256>}]} {
    %c0 = arith.constant 0 : index
    %c0_0 = arith.constant 0 : index
    %c0_1 = arith.constant 0 : index
    %0 = vector.load %arg2[%c0, %c0_0, %c0_1] : memref<1x256x256xf32, #tpu.memory_space<vmem>>, vector<1x256x256xf32>
    %1 = vector.shape_cast %0 : vector<1x256x256xf32> to vector<256x256xf32>
    %2 = arith.truncf %1 : vector<256x256xf32> to vector<256x256xbf16>
    %c0_2 = arith.constant 0 : index
    %c0_3 = arith.constant 0 : index
    %3 = vector.load %arg3[%c0_2, %c0_3] : memref<256x256xbf16, #tpu.memory_space<vmem>>, vector<256x256xbf16>
    %cst = arith.constant dense<0.000000e+00> : vector<256x256xf32>
    %4 = tpu.matmul %3, %2, %cst {dimension_numbers = #tpu.dot_dimension_numbers<[1], [0], [0], [1], [0, 0, 1, 1], [], []>} : vector<256x256xbf16>, vector<256x256xbf16>, vector<256x256xf32> -> vector<256x256xf32>
    %cst_4 = arith.constant 0.000000e+00 : f32
    %5 = vector.broadcast %cst_4 : f32 to vector<256x256xf32>
    %6 = arith.maximumf %4, %5 : vector<256x256xf32>
    %7 = arith.truncf %6 : vector<256x256xf32> to vector<256x256xbf16>
    %c0_5 = arith.constant 0 : index
    %c0_6 = arith.constant 0 : index
    %8 = vector.load %arg4[%c0_5, %c0_6] : memref<128x256xbf16, #tpu.memory_space<vmem>>, vector<128x256xbf16>
    %cst_7 = arith.constant dense<0.000000e+00> : vector<128x256xf32>
    %9 = tpu.matmul %8, %7, %cst_7 {dimension_numbers = #tpu.dot_dimension_numbers<[1], [0], [0], [1], [0, 0, 1, 1], [], []>} : vector<128x256xbf16>, vector<256x256xbf16>, vector<128x256xf32> -> vector<128x256xf32>
    %cst_8 = arith.constant 0.000000e+00 : f32
    %10 = vector.broadcast %cst_8 : f32 to vector<128x256xf32>
    %11 = arith.maximumf %9, %10 : vector<128x256xf32>
    %c0_9 = arith.constant 0 : index
    %c0_10 = arith.constant 0 : index
    %12 = vector.load %arg5[%c0_9, %c0_10] : memref<128x1xf32, #tpu.memory_space<vmem>>, vector<128x1xf32>
    %13 = vector.broadcast %12 : vector<128x1xf32> to vector<128x256xf32>
    %14 = arith.mulf %11, %13 : vector<128x256xf32>
    %cst_11 = arith.constant dense<0.000000e+00> : vector<256xf32>
    %15 = vector.multi_reduction <add>, %14, %cst_11 [0] : vector<128x256xf32> to vector<256xf32>
    %16 = vector.shape_cast %15 : vector<256xf32> to vector<1x256xf32>
    %17 = arith.negf %16 : vector<1x256xf32>
    %18 = math.exp %17 : vector<1x256xf32>
    %cst_12 = arith.constant 1.000000e+00 : f32
    %19 = vector.broadcast %cst_12 : f32 to vector<1x256xf32>
    %20 = arith.addf %19, %18 : vector<1x256xf32>
    %21 = arith.divf %19, %20 : vector<1x256xf32>
    %c0_13 = arith.constant 0 : index
    %c0_14 = arith.constant 0 : index
    %c0_15 = arith.constant 0 : index
    %22 = vector.load %arg6[%c0_13, %c0_14, %c0_15] : memref<1x1x256xf32, #tpu.memory_space<vmem>>, vector<1x1x256xf32>
    %23 = vector.shape_cast %22 : vector<1x1x256xf32> to vector<1x256xf32>
    %24 = vector.shape_cast %21 : vector<1x256xf32> to vector<1x1x256xf32>
    tpu.vector_store %arg6[%c0_13, %c0_14, %c0_15], %24 {strides = array<i32>} : memref<1x1x256xf32, #tpu.memory_space<vmem>>, vector<1x1x256xf32>,
    return
  }
  func.func @transform_0(%arg0: i32, %arg1: i32) -> (i32, i32, i32) {
    %c0_i32 = arith.constant 0 : i32
    %c0_i32_0 = arith.constant 0 : i32
    return %arg0, %c0_i32, %arg1 : i32, i32, i32
  }
  func.func @transform_1(%arg0: i32, %arg1: i32) -> (i32, i32) {
    %c0_i32 = arith.constant 0 : i32
    %c0_i32_0 = arith.constant 0 : i32
    %c0_i32_1 = arith.constant 0 : i32
    return %c0_i32, %c0_i32_0 : i32, i32
  }
  func.func @transform_2(%arg0: i32, %arg1: i32) -> (i32, i32) {
    %c0_i32 = arith.constant 0 : i32
    %c0_i32_0 = arith.constant 0 : i32
    %c0_i32_1 = arith.constant 0 : i32
    return %c0_i32, %c0_i32_0 : i32, i32
  }
  func.func @transform_3(%arg0: i32, %arg1: i32) -> (i32, i32) {
    %c0_i32 = arith.constant 0 : i32
    %c0_i32_0 = arith.constant 0 : i32
    %c0_i32_1 = arith.constant 0 : i32
    return %c0_i32, %c0_i32_0 : i32, i32
  }
  func.func @transform_4(%arg0: i32, %arg1: i32) -> (i32, i32, i32) {
    %c0_i32 = arith.constant 0 : i32
    %c0_i32_0 = arith.constant 0 : i32
    return %arg0, %c0_i32, %arg1 : i32, i32, i32
  }
}

</mosaic_0001>

<bundles_post_ra>
// kernel: netd_pixel_forward.1
= control target key start
LH: loop header
LB: loop body
LE: loop exit
PB: predicated region body
PF: predicated region fallthrough
CT: control target
= control target key end

     0   :  { %s1559_s15 = smov 0   ;;  %s1561_s16 = smov 0   ;;  %s1854_s0 = inlined_call_operand.vmem [shape: f32[2,256,256], index: 0, kind: input, shape index: {}]   ;;  %s1855_s1 = inlined_call_operand.vmem [shape: bf16[256,256], index: 1, kind: input, shape index: {}]   ;;  %s1856_s2 = inlined_call_operand.vmem [shape: bf16[128,256], index: 2, kind: input, shape index: {}]   ;;  %s1857_s3 = inlined_call_operand.vmem [shape: f32[128,1], index: 3, kind: input, shape index: {}]   ;;  %s1858_s4 = inlined_call_operand.vmem [shape: f32[2,1,256], index: 4, kind: output, shape index: {}]  }
   0x1   :  { %s1563_s17 = smov 0  }
   0x2 LB: > { %s26_s18 = sadd.s32 1, %s1526_s16  ;;  %p1343_p0 = scmp.ge.s32.totalorder %s1530_s17, 1  ;;  %s1530_s17 = sphi %s1563_s17, %s14_s17   ;;  %s1526_s16 = sphi %s1561_s16, %s1860_s16   ;;  %s1522_s15 = sphi %s1559_s15, %s1859_s15  }
   0x3   : > { %p28_p1 = scmp.ge.s32.totalorder %s26_s18, 2  ;;  %p183_p2 = scmp.lt.s32.totalorder %s1530_s17, 3 }
   0x5   : > { %s1862_s18 = smov (%p28_p1, %s26_s18), 0  ;;  %p184_p3 = pnand %p1343_p0, %p183_p2 }
   0x6   : > { %p217_p4 = scmp.lt.s32.totalorder (!%p184_p3), %s1522_s15, 1  ;;  %v1430_v0 = vld [vmem:[%s1855_s1 + $0x4] ss:$8 sps:$4 sm:$0xff] (!%p184_p3)  }
   0x7   : > { %187 = sbr.rel (%p184_p3) target bundleno = 749 (0x2ed), region = 36  ;;  %555 = vmatprep.mubr.bf16.mxu0 (!%p184_p3), %v1430_v0 }
   0xe   : > { %s1864_s15 = smov (!%p217_p4, %s1522_s15), 1 }
   0xf   : > { %s1399_s21 = sshll.u32 %s1864_s15, 9  ;;  %s1346_s19 = sshll.u32 %s1864_s15, 1 }
  0x10   : > { %s1586_s24 = scalar_lea.vmem %s1854_s0, %s1399_s21  ;;  %s233_s22 = scalar_lea.vmem %s1858_s4, %s1346_s19 }
  0x11   : > { %v236_v1 = vld [vmem:[%s1586_s24 + $0x8] sm:$0xff]  ;;  %v238_v2 = vld [vmem:[%s1586_s24 + $0x18] sm:$0xff]  ;;  %v235_v3 = vld [vmem:[%s1586_s24] sm:$0xff] }
  0x12   : > { %v300_v4 = vpack.c.bf16 %v238_v2, %v236_v1  ;;  %v237_v5 = vld [vmem:[%s1586_s24 + $0x10] sm:$0xff]  ;;  %v240_v6 = vld [vmem:[%s1586_s24 + $0x28] sm:$0xff]  ;;  %v242_v7 = vld [vmem:[%s1586_s24 + $0x38] sm:$0xff] }
  0x13   : > { %v299_v8 = vpack.c.bf16 %v237_v5, %v235_v3  ;;  %v302_v9 = vpack.c.bf16 %v242_v7, %v240_v6  ;;  %v239_v10 = vld [vmem:[%s1586_s24 + $0x20] sm:$0xff]  ;;  %v241_v11 = vld [vmem:[%s1586_s24 + $0x30] sm:$0xff]  ;;  %v244_v12 = vld [vmem:[%s1586_s24 + $0x48] sm:$0xff] }
  0x14   : > { %523 = vmatprep.subr.bf16.mxu0 %v300_v4  ;;  %v246_v13 = vld [vmem:[%s1586_s24 + $0x58] sm:$0xff]  ;;  %v301_v14 = vpack.c.bf16 %v241_v11, %v239_v10  ;;  %v243_v16 = vld [vmem:[%s1586_s24 + $0x40] sm:$0xff]  ;;  %v245_v17 = vld [vmem:[%s1586_s24 + $0x50] sm:$0xff] }
  0x15   : > { %524 = vmatpush1.bf16.msra.mxu0 %v299_v8  ;;  %v304_v15 = vpack.c.bf16 %v246_v13, %v244_v12  ;;  %v248_v18 = vld [vmem:[%s1586_s24 + $0x68] sm:$0xff]  ;;  %v250_v19 = vld [vmem:[%s1586_s24 + $0x78] sm:$0xff]  ;;  %v303_v20 = vpack.c.bf16 %v245_v17, %v243_v16  ;;  %v247_v22 = vld [vmem:[%s1586_s24 + $0x60] sm:$0xff] }
  0x16   : > { %525 = vmatprep.subr.bf16.mxu0 %v302_v9  ;;  %v306_v21 = vpack.c.bf16 %v250_v19, %v248_v18  ;;  %v249_v23 = vld [vmem:[%s1586_s24 + $0x70] sm:$0xff]  ;;  %v252_v24 = vld [vmem:[%s1586_s24 + $0x88] sm:$0xff]  ;;  %v254_v25 = vld [vmem:[%s1586_s24 + $0x98] sm:$0xff] }
  0x17   : > { %v305_v26 = vpack.c.bf16 %v249_v23, %v247_v22  ;;  %v308_v27 = vpack.c.bf16 %v254_v25, %v252_v24  ;;  %v251_v28 = vld [vmem:[%s1586_s24 + $0x80] sm:$0xff]  ;;  %v253_v29 = vld [vmem:[%s1586_s24 + $0x90] sm:$0xff]  ;;  %v256_v30 = vld [vmem:[%s1586_s24 + $0xa8] sm:$0xff] }
  0x18   : > { %v258_v31 = vld [vmem:[%s1586_s24 + $0xb8] sm:$0xff]  ;;  %v307_v32 = vpack.c.bf16 %v253_v29, %v251_v28  ;;  %v255_v34 = vld [vmem:[%s1586_s24 + $0xa0] sm:$0xff]  ;;  %v257_v35 = vld [vmem:[%s1586_s24 + $0xb0] sm:$0xff] }
  0x19   : > { %526 = vmatpush1.bf16.msra.mxu0 %v301_v14  ;;  %v310_v33 = vpack.c.bf16 %v258_v31, %v256_v30  ;;  %v260_v36 = vld [vmem:[%s1586_s24 + $0xc8] sm:$0xff]  ;;  %v262_v37 = vld [vmem:[%s1586_s24 + $0xd8] sm:$0xff]  ;;  %v309_v38 = vpack.c.bf16 %v257_v35, %v255_v34  ;;  %v259_v40 = vld [vmem:[%s1586_s24 + $0xc0] sm:$0xff] }
  0x1a   : > { %527 = vmatprep.subr.bf16.mxu0 %v304_v15  ;;  %v312_v39 = vpack.c.bf16 %v262_v37, %v260_v36  ;;  %v261_v41 = vld [vmem:[%s1586_s24 + $0xd0] sm:$0xff]  ;;  %v264_v42 = vld [vmem:[%s1586_s24 + $0xe8] sm:$0xff]  ;;  %v266_v43 = vld [vmem:[%s1586_s24 + $0xf8] sm:$0xff] }
  0x1b   : > { %v311_v44 = vpack.c.bf16 %v261_v41, %v259_v40  ;;  %v263_v45 = vld [vmem:[%s1586_s24 + $0xe0] sm:$0xff]  ;;  %v314_v46 = vpack.c.bf16 %v266_v43, %v264_v42  ;;  %v265_v47 = vld [vmem:[%s1586_s24 + $0xf0] sm:$0xff]  ;;  %v268_v48 = vld [vmem:[%s1586_s24 + $0x108] sm:$0xff] }
  0x1c   : > { %v270_v49 = vld [vmem:[%s1586_s24 + $0x118] sm:$0xff]  ;;  %v313_v50 = vpack.c.bf16 %v265_v47, %v263_v45  ;;  %v267_v51 = vld [vmem:[%s1586_s24 + $0x100] sm:$0xff]  ;;  %v269_v53 = vld [vmem:[%s1586_s24 + $0x110] sm:$0xff] }
  0x1d   : > { %528 = vmatpush1.bf16.msra.mxu0 %v303_v20  ;;  %v316_v52 = vpack.c.bf16 %v270_v49, %v268_v48  ;;  %v272_v54 = vld [vmem:[%s1586_s24 + $0x128] sm:$0xff]  ;;  %v274_v55 = vld [vmem:[%s1586_s24 + $0x138] sm:$0xff]  ;;  %v271_v56 = vld [vmem:[%s1586_s24 + $0x120] sm:$0xff]  ;;  %v315_v58 = vpack.c.bf16 %v269_v53, %v267_v51 }
  0x1e   : > { %529 = vmatprep.subr.bf16.mxu0 %v306_v21  ;;  %v273_v57 = vld [vmem:[%s1586_s24 + $0x130] sm:$0xff]  ;;  %v276_v59 = vld [vmem:[%s1586_s24 + $0x148] sm:$0xff]  ;;  %v278_v60 = vld [vmem:[%s1586_s24 + $0x158] sm:$0xff]  ;;  %v318_v61 = vpack.c.bf16 %v274_v55, %v272_v54 }
  0x1f   : > { %v275_v62 = vld [vmem:[%s1586_s24 + $0x140] sm:$0xff]  ;;  %v277_v63 = vld [vmem:[%s1586_s24 + $0x150] sm:$0xff]  ;;  %v317_v0 = vpack.c.bf16 %v273_v57, %v271_v56  ;;  %v280_v1 = vld [vmem:[%s1586_s24 + $0x168] sm:$0xff]  ;;  %v320_v3 = vpack.c.bf16 %v278_v60, %v276_v59 }
  0x20   : > { %v282_v2 = vld [vmem:[%s1586_s24 + $0x178] sm:$0xff]  ;;  %v319_v4 = vpack.c.bf16 %v277_v63, %v275_v62  ;;  %v279_v6 = vld [vmem:[%s1586_s24 + $0x160] sm:$0xff]  ;;  %v281_v7 = vld [vmem:[%s1586_s24 + $0x170] sm:$0xff] }
  0x21   : > { %530 = vmatpush1.bf16.msra.mxu0 %v305_v26  ;;  %v322_v5 = vpack.c.bf16 %v282_v2, %v280_v1  ;;  %v284_v8 = vld [vmem:[%s1586_s24 + $0x188] sm:$0xff]  ;;  %v286_v9 = vld [vmem:[%s1586_s24 + $0x198] sm:$0xff]  ;;  %v321_v10 = vpack.c.bf16 %v281_v7, %v279_v6  ;;  %v283_v12 = vld [vmem:[%s1586_s24 + $0x180] sm:$0xff] }
  0x22   : > { %531 = vmatprep.subr.bf16.mxu0 %v308_v27  ;;  %v324_v11 = vpack.c.bf16 %v286_v9, %v284_v8  ;;  %v285_v13 = vld [vmem:[%s1586_s24 + $0x190] sm:$0xff]  ;;  %v288_v14 = vld [vmem:[%s1586_s24 + $0x1a8] sm:$0xff]  ;;  %v290_v15 = vld [vmem:[%s1586_s24 + $0x1b8] sm:$0xff] }
  0x23   : > { %v323_v16 = vpack.c.bf16 %v285_v13, %v283_v12  ;;  %v326_v17 = vpack.c.bf16 %v290_v15, %v288_v14  ;;  %v287_v18 = vld [vmem:[%s1586_s24 + $0x1a0] sm:$0xff]  ;;  %v289_v19 = vld [vmem:[%s1586_s24 + $0x1b0] sm:$0xff]  ;;  %v292_v20 = vld [vmem:[%s1586_s24 + $0x1c8] sm:$0xff] }
  0x24   : > { %v294_v21 = vld [vmem:[%s1586_s24 + $0x1d8] sm:$0xff]  ;;  %v325_v22 = vpack.c.bf16 %v289_v19, %v287_v18  ;;  %v291_v24 = vld [vmem:[%s1586_s24 + $0x1c0] sm:$0xff]  ;;  %v293_v25 = vld [vmem:[%s1586_s24 + $0x1d0] sm:$0xff] }
  0x25   : > { %532 = vmatpush1.bf16.msra.mxu0 %v307_v32  ;;  %v328_v23 = vpack.c.bf16 %v294_v21, %v292_v20  ;;  %v296_v26 = vld [vmem:[%s1586_s24 + $0x1e8] sm:$0xff]  ;;  %v298_v27 = vld [vmem:[%s1586_s24 + $0x1f8] sm:$0xff]  ;;  %v327_v28 = vpack.c.bf16 %v293_v25, %v291_v24  ;;  %v295_v30 = vld [vmem:[%s1586_s24 + $0x1e0] sm:$0xff] }
  0x26   : > { %533 = vmatprep.subr.bf16.mxu0 %v310_v33  ;;  %v330_v29 = vpack.c.bf16 %v298_v27, %v296_v26  ;;  %v297_v31 = vld [vmem:[%s1586_s24 + $0x1f0] sm:$0xff]  ;;  %v1428_v33 = vld [vmem:[%s1855_s1] ss:$8 sps:$4 sm:$0xff]   ;;  %v1434_v36 = vld [vmem:[%s1855_s1 + $0x24] ss:$8 sps:$4 sm:$0xff]  }
  0x27   : > { %v329_v32 = vpack.c.bf16 %v297_v31, %v295_v30  ;;  %v1431_v34 = vld [vmem:[%s1855_s1 + $0x14] ss:$8 sps:$4 sm:$0xff]   ;;  %v1433_v35 = vld [vmem:[%s1855_s1 + $0x10] ss:$8 sps:$4 sm:$0xff]   ;;  %v1436_v37 = vld [vmem:[%s1855_s1 + $0x20] ss:$8 sps:$4 sm:$0xff]  }
  0x28   : > { %v1440_v40 = vld [vmem:[%s1855_s1 + $0x44] ss:$8 sps:$4 sm:$0xff]   ;;  %v1442_v41 = vld [vmem:[%s1855_s1 + $0x40] ss:$8 sps:$4 sm:$0xff]   ;;  %v1443_v42 = vld [vmem:[%s1855_s1 + $0x54] ss:$8 sps:$4 sm:$0xff]  }
  0x29   : > { %534 = vmatpush1.bf16.msra.mxu0 %v309_v38  ;;  %v1437_v38 = vld [vmem:[%s1855_s1 + $0x34] ss:$8 sps:$4 sm:$0xff]   ;;  %v1445_v43 = vld [vmem:[%s1855_s1 + $0x50] ss:$8 sps:$4 sm:$0xff]   ;;  %v1448_v45 = vld [vmem:[%s1855_s1 + $0x60] ss:$8 sps:$4 sm:$0xff]  }
  0x2a   : > { %535 = vmatprep.subr.bf16.mxu0 %v312_v39  ;;  %v1439_v39 = vld [vmem:[%s1855_s1 + $0x30] ss:$8 sps:$4 sm:$0xff]   ;;  %v1452_v48 = vld [vmem:[%s1855_s1 + $0x84] ss:$8 sps:$4 sm:$0xff]   ;;  %v1454_v49 = vld [vmem:[%s1855_s1 + $0x80] ss:$8 sps:$4 sm:$0xff]  }
  0x2b   : > { %v1451_v47 = vld [vmem:[%s1855_s1 + $0x70] ss:$8 sps:$4 sm:$0xff]   ;;  %v1460_v53 = vld [vmem:[%s1855_s1 + $0xa0] ss:$8 sps:$4 sm:$0xff]   ;;  %v1461_v54 = vld [vmem:[%s1855_s1 + $0xb4] ss:$8 sps:$4 sm:$0xff]  }
  0x2c   : > { %v1457_v51 = vld [vmem:[%s1855_s1 + $0x90] ss:$8 sps:$4 sm:$0xff]   ;;  %v1464_v56 = vld [vmem:[%s1855_s1 + $0xc4] ss:$8 sps:$4 sm:$0xff]   ;;  %v1466_v57 = vld [vmem:[%s1855_s1 + $0xc0] ss:$8 sps:$4 sm:$0xff]  }
  0x2d   : > { %536 = vmatpush1.bf16.msra.mxu0 %v311_v44  ;;  %v1446_v44 = vld [vmem:[%s1855_s1 + $0x64] ss:$8 sps:$4 sm:$0xff]   ;;  %v1463_v55 = vld [vmem:[%s1855_s1 + $0xb0] ss:$8 sps:$4 sm:$0xff]   ;;  %v1473_v62 = vld [vmem:[%s1855_s1 + $0xf4] ss:$8 sps:$4 sm:$0xff]  }
  0x2e   : > { %537 = vmatprep.subr.bf16.mxu0 %v314_v46  ;;  %v1449_v46 = vld [vmem:[%s1855_s1 + $0x74] ss:$8 sps:$4 sm:$0xff]   ;;  %v1469_v59 = vld [vmem:[%s1855_s1 + $0xd0] ss:$8 sps:$4 sm:$0xff]   ;;  %v1470_v60 = vld [vmem:[%s1855_s1 + $0xe4] ss:$8 sps:$4 sm:$0xff]  }
  0x2f   : > { %v1475_v63 = vld [vmem:[%s1855_s1 + $0xf0] ss:$8 sps:$4 sm:$0xff]   ;;  %v1478_v2 = vld [vmem:[%s1856_s2 + $0x4] ss:$8 sps:$4 sm:$0xff]  }
  0x30   : > { %940 = vmatprep.mubr.bf16.mxu1 %v1478_v2 }
  0x31   : > { %538 = vmatpush1.bf16.msra.mxu0 %v313_v50  ;;  %v1455_v50 = vld [vmem:[%s1855_s1 + $0x94] ss:$8 sps:$4 sm:$0xff]  }
  0x32   : > { %539 = vmatprep.subr.bf16.mxu0 %v316_v52  ;;  %v1458_v52 = vld [vmem:[%s1855_s1 + $0xa4] ss:$8 sps:$4 sm:$0xff]  }
  0x35   : > { %540 = vmatpush1.bf16.msra.mxu0 %v315_v58  ;;  %v1467_v58 = vld [vmem:[%s1855_s1 + $0xd4] ss:$8 sps:$4 sm:$0xff]  }
  0x36   : > { %541 = vmatprep.subr.bf16.mxu0 %v318_v61  ;;  %v1472_v61 = vld [vmem:[%s1855_s1 + $0xe0] ss:$8 sps:$4 sm:$0xff]  }
  0x39   : > { %542 = vmatpush1.bf16.msra.mxu0 %v317_v0 }
  0x3a   : > { %543 = vmatprep.subr.bf16.mxu0 %v320_v3 }
  0x3d   : > { %544 = vmatpush1.bf16.msra.mxu0 %v319_v4 }
  0x3e   : > { %545 = vmatprep.subr.bf16.mxu0 %v322_v5 }
  0x41   : > { %546 = vmatpush1.bf16.msra.mxu0 %v321_v10 }
  0x42   : > { %547 = vmatprep.subr.bf16.mxu0 %v324_v11 }
  0x45   : > { %548 = vmatpush1.bf16.msra.mxu0 %v323_v16 }
  0x46   : > { %549 = vmatprep.subr.bf16.mxu0 %v326_v17 }
  0x49   : > { %550 = vmatpush1.bf16.msra.mxu0 %v325_v22 }
  0x4a   : > { %551 = vmatprep.subr.bf16.mxu0 %v328_v23 }
  0x4d   : > { %552 = vmatpush1.bf16.msra.mxu0 %v327_v28 }
  0x4e   : > { %553 = vmatprep.subr.bf16.mxu0 %v330_v29 }
  0x51   : > { %554 = vmatpush1.bf16.msra.mxu0 %v329_v32 }
  0x54   : > { %556 = vmatmul.mubr.bf16.vlgmr.msra.gmra.mrb[0].mxu0 %v1428_v33 }
  0x55   : > { %565 = vmatprep.mubr.bf16.mxu0 %v1431_v34 }
  0x5c   : > { %566 = vmatmul.mubr.bf16.gmra.mrb[4].mxu0 %v1433_v35 }
  0x5d   : > { %575 = vmatprep.mubr.bf16.mxu0 %v1434_v36 }
  0x64   : > { %576 = vmatmul.mubr.bf16.gmra.mrb[8].mxu0 %v1436_v37 }
  0x65   : > { %585 = vmatprep.mubr.bf16.mxu0 %v1437_v38 }
  0x6c   : > { %586 = vmatmul.mubr.bf16.gmra.mrb[12].mxu0 %v1439_v39 }
  0x6d   : > { %595 = vmatprep.mubr.bf16.mxu0 %v1440_v40 }
  0x74   : > { %596 = vmatmul.mubr.bf16.gmra.mrb[16].mxu0 %v1442_v41 }
  0x75   : > { %605 = vmatprep.mubr.bf16.mxu0 %v1443_v42 }
  0x7c   : > { %606 = vmatmul.mubr.bf16.gmra.mrb[20].mxu0 %v1445_v43 }
  0x7d   : > { %615 = vmatprep.mubr.bf16.mxu0 %v1446_v44 }
  0x84   : > { %616 = vmatmul.mubr.bf16.gmra.mrb[24].mxu0 %v1448_v45 }
  0x85   : > { %625 = vmatprep.mubr.bf16.mxu0 %v1449_v46 }
  0x8c   : > { %626 = vmatmul.mubr.bf16.gmra.mrb[28].mxu0 %v1451_v47 }
  0x8d   : > { %635 = vmatprep.mubr.bf16.mxu0 %v1452_v48 }
  0x94   : > { %636 = vmatmul.mubr.bf16.gmra.mrb[32].mxu0 %v1454_v49 }
  0x95   : > { %645 = vmatprep.mubr.bf16.mxu0 %v1455_v50 }
  0x9c   : > { %646 = vmatmul.mubr.bf16.gmra.mrb[36].mxu0 %v1457_v51 }
  0x9d   : > { %655 = vmatprep.mubr.bf16.mxu0 %v1458_v52 }
  0xa4   : > { %656 = vmatmul.mubr.bf16.gmra.mrb[40].mxu0 %v1460_v53 }
  0xa5   : > { %665 = vmatprep.mubr.bf16.mxu0 %v1461_v54 }
  0xac   : > { %666 = vmatmul.mubr.bf16.gmra.mrb[44].mxu0 %v1463_v55 }
  0xad   : > { %675 = vmatprep.mubr.bf16.mxu0 %v1464_v56 }
  0xb4   : > { %676 = vmatmul.mubr.bf16.gmra.mrb[48].mxu0 %v1466_v57 }
  0xb5   : > { %685 = vmatprep.mubr.bf16.mxu0 %v1467_v58 }
  0xbc   : > { %686 = vmatmul.mubr.bf16.gmra.mrb[52].mxu0 %v1469_v59 }
  0xbd   : > { %695 = vmatprep.mubr.bf16.mxu0 %v1470_v60 }
  0xc4   : > { %696 = vmatmul.mubr.bf16.gmra.mrb[56].mxu0 %v1472_v61 }
  0xc5   : > { %705 = vmatprep.mubr.bf16.mxu0 %v1473_v62 }
  0xcc   : > { %706 = vmatmul.mubr.bf16.gmra.mrb[60].mxu0 %v1475_v63 }
 0x127   : > { %v557_v0 = vpop.f32.mrb[0].mxu0 }
 0x128   : > { %v559_v1 = vpop.f32.mrb[1].mxu0  ;;  %v716_v4 = vmax.f32 %v557_v0, 0.0 }
 0x129   : > { %v561_v3 = vpop.f32.mrb[2].mxu0  ;;  %v717_v7 = vmax.f32 %v559_v1, 0.0 }
 0x12a   : > { %v718_v5 = vmax.f32 %v561_v3, 0.0  ;;  %v563_v6 = vpop.f32.mrb[3].mxu0 }
 0x12b   : > { %v719_v8 = vmax.f32 %v563_v6, 0.0 }
 0x12c   : > { %v780_v9 = vpack.c.bf16 %v718_v5, %v716_v4 }
 0x12d   : > { %v781_v10 = vpack.c.bf16 %v719_v8, %v717_v7 }
 0x12f   : > { %v567_v11 = vpop.f32.mrb[4].mxu0  ;;  %908 = vmatprep.subr.bf16.mxu1 %v781_v10 }
 0x130   : > { %v569_v12 = vpop.f32.mrb[5].mxu0  ;;  %909 = vmatpush1.bf16.msra.mxu1 %v780_v9  ;;  %v720_v14 = vmax.f32 %v567_v11, 0.0 }
 0x131   : > { %v571_v13 = vpop.f32.mrb[6].mxu0  ;;  %v721_v17 = vmax.f32 %v569_v12, 0.0 }
 0x132   : > { %v722_v15 = vmax.f32 %v571_v13, 0.0  ;;  %v573_v16 = vpop.f32.mrb[7].mxu0 }
 0x133   : > { %v723_v18 = vmax.f32 %v573_v16, 0.0  ;;  %v1055_v16 = vld [vmem:[%s1857_s3 + $0x10] sm:$0xff] }
 0x134   : > { %v782_v19 = vpack.c.bf16 %v722_v15, %v720_v14  ;;  %v1053_v15 = vld [vmem:[%s1857_s3] sm:$0xff] }
 0x135   : > { %v783_v20 = vpack.c.bf16 %v723_v18, %v721_v17  ;;  %v1532_v18 = vmov 0  }
 0x136   : > { %1426 = vset.pattern.permute.xlu0 %v1532_v18  ;;  %1427 = vset.pattern.permute.xlu1 %v1532_v18 }
 0x137   : > { %v577_v21 = vpop.f32.mrb[8].mxu0  ;;  %910 = vmatprep.subr.bf16.mxu1 %v783_v20  ;;  %1071 = vperm.xlu0 %1426, %v1053_v15   ;;  %v1054_v20 = vld [vmem:[%s1857_s3 + $0x8] sm:$0xff] }
 0x138   : > { %v579_v22 = vpop.f32.mrb[9].mxu0  ;;  %911 = vmatpush1.bf16.msra.mxu1 %v782_v19  ;;  %v724_v24 = vmax.f32 %v577_v21, 0.0  ;;  %1081 = vperm.xlu1 %1427, %v1055_v16   ;;  %v1056_v21 = vld [vmem:[%s1857_s3 + $0x18] sm:$0xff] }
 0x139   : > { %v581_v23 = vpop.f32.mrb[10].mxu0  ;;  %v725_v27 = vmax.f32 %v579_v22, 0.0 }
 0x13a   : > { %v726_v25 = vmax.f32 %v581_v23, 0.0  ;;  %v583_v26 = vpop.f32.mrb[11].mxu0 }
 0x13b   : > { %v727_v28 = vmax.f32 %v583_v26, 0.0  ;;  %1076 = vperm.xlu0 %1426, %v1054_v20  }
 0x13c   : > { %v784_v29 = vpack.c.bf16 %v726_v25, %v724_v24  ;;  %1086 = vperm.xlu1 %1427, %v1056_v21  }
 0x13d   : > { %v785_v30 = vpack.c.bf16 %v727_v28, %v725_v27  ;;  %v1057_v28 = vld [vmem:[%s1857_s3 + $0x20] sm:$0xff] }
 0x13f   : > { %v587_v31 = vpop.f32.mrb[12].mxu0  ;;  %912 = vmatprep.subr.bf16.mxu1 %v785_v30  ;;  %1091 = vperm.xlu0 %1426, %v1057_v28  }
 0x140   : > { %v589_v32 = vpop.f32.mrb[13].mxu0  ;;  %913 = vmatpush1.bf16.msra.mxu1 %v784_v29  ;;  %v728_v34 = vmax.f32 %v587_v31, 0.0  ;;  %v1058_v29 = vld [vmem:[%s1857_s3 + $0x28] sm:$0xff] }
 0x141   : > { %v591_v33 = vpop.f32.mrb[14].mxu0  ;;  %v729_v37 = vmax.f32 %v589_v32, 0.0  ;;  %1096 = vperm.xlu1 %1427, %v1058_v29  }
 0x142   : > { %v730_v35 = vmax.f32 %v591_v33, 0.0  ;;  %v593_v36 = vpop.f32.mrb[15].mxu0 }
 0x143   : > { %v731_v38 = vmax.f32 %v593_v36, 0.0 }
 0x144   : > { %v786_v39 = vpack.c.bf16 %v730_v35, %v728_v34  ;;  %v1059_v34 = vld [vmem:[%s1857_s3 + $0x30] sm:$0xff]  ;;  %v1060_v35 = vld [vmem:[%s1857_s3 + $0x38] sm:$0xff] }
 0x145   : > { %v787_v40 = vpack.c.bf16 %v731_v38, %v729_v37  ;;  %1101 = vperm.xlu0 %1426, %v1059_v34   ;;  %1106 = vperm.xlu1 %1427, %v1060_v35  }
 0x147   : > { %v597_v41 = vpop.f32.mrb[16].mxu0  ;;  %914 = vmatprep.subr.bf16.mxu1 %v787_v40 }
 0x148   : > { %v599_v42 = vpop.f32.mrb[17].mxu0  ;;  %915 = vmatpush1.bf16.msra.mxu1 %v786_v39  ;;  %v732_v44 = vmax.f32 %v597_v41, 0.0 }
 0x149   : > { %v601_v43 = vpop.f32.mrb[18].mxu0  ;;  %v733_v47 = vmax.f32 %v599_v42, 0.0  ;;  %v1061_v42 = vld [vmem:[%s1857_s3 + $0x40] sm:$0xff] }
 0x14a   : > { %v734_v45 = vmax.f32 %v601_v43, 0.0  ;;  %v603_v46 = vpop.f32.mrb[19].mxu0  ;;  %v1062_v43 = vld [vmem:[%s1857_s3 + $0x48] sm:$0xff]  ;;  %1111 = vperm.xlu0 %1426, %v1061_v42  }
 0x14b   : > { %v735_v48 = vmax.f32 %v603_v46, 0.0  ;;  %1116 = vperm.xlu1 %1427, %v1062_v43  }
 0x14c   : > { %v788_v49 = vpack.c.bf16 %v734_v45, %v732_v44 }
 0x14d   : > { %v789_v50 = vpack.c.bf16 %v735_v48, %v733_v47  ;;  %v1063_v48 = vld [vmem:[%s1857_s3 + $0x50] sm:$0xff] }
 0x14e   : > { %1121 = vperm.xlu0 %1426, %v1063_v48  }
 0x14f   : > { %v607_v51 = vpop.f32.mrb[20].mxu0  ;;  %916 = vmatprep.subr.bf16.mxu1 %v789_v50 }
 0x150   : > { %v609_v52 = vpop.f32.mrb[21].mxu0  ;;  %917 = vmatpush1.bf16.msra.mxu1 %v788_v49  ;;  %v736_v54 = vmax.f32 %v607_v51, 0.0  ;;  %v1064_v49 = vld [vmem:[%s1857_s3 + $0x58] sm:$0xff] }
 0x151   : > { %v611_v53 = vpop.f32.mrb[22].mxu0  ;;  %v737_v57 = vmax.f32 %v609_v52, 0.0  ;;  %1126 = vperm.xlu1 %1427, %v1064_v49  }
 0x152   : > { %v738_v55 = vmax.f32 %v611_v53, 0.0  ;;  %v613_v56 = vpop.f32.mrb[23].mxu0 }
 0x153   : > { %v739_v58 = vmax.f32 %v613_v56, 0.0  ;;  %v1065_v56 = vld [vmem:[%s1857_s3 + $0x60] sm:$0xff] }
 0x154   : > { %v790_v59 = vpack.c.bf16 %v738_v55, %v736_v54  ;;  %1131 = vperm.xlu0 %1426, %v1065_v56   ;;  %v1487_v56 = vld [vmem:[%s1856_s2 + $0x30] ss:$8 sps:$4 sm:$0xff]  }
 0x155   : > { %v791_v60 = vpack.c.bf16 %v739_v58, %v737_v57  ;;  %v1066_v57 = vld [vmem:[%s1857_s3 + $0x68] sm:$0xff] }
 0x156   : > { %1136 = vperm.xlu1 %1427, %v1066_v57   ;;  %v1488_v57 = vld [vmem:[%s1856_s2 + $0x44] ss:$8 sps:$4 sm:$0xff]  }
 0x157   : > { %v617_v61 = vpop.f32.mrb[24].mxu0  ;;  %918 = vmatprep.subr.bf16.mxu1 %v791_v60 }
 0x158   : > { %v619_v62 = vpop.f32.mrb[25].mxu0  ;;  %919 = vmatpush1.bf16.msra.mxu1 %v790_v59  ;;  %v740_v0 = vmax.f32 %v617_v61, 0.0 }
 0x159   : > { %v621_v63 = vpop.f32.mrb[26].mxu0  ;;  %v741_v3 = vmax.f32 %v619_v62, 0.0  ;;  %v1067_v62 = vld [vmem:[%s1857_s3 + $0x70] sm:$0xff] }
 0x15a   : > { %v742_v1 = vmax.f32 %v621_v63, 0.0  ;;  %v623_v2 = vpop.f32.mrb[27].mxu0  ;;  %v1068_v63 = vld [vmem:[%s1857_s3 + $0x78] sm:$0xff]  ;;  %1141 = vperm.xlu0 %1426, %v1067_v62   ;;  %v1496_v62 = vld [vmem:[%s1856_s2 + $0x60] ss:$8 sps:$4 sm:$0xff]  }
 0x15b   : > { %v743_v4 = vmax.f32 %v623_v2, 0.0  ;;  %1146 = vperm.xlu1 %1427, %v1068_v63   ;;  %v1497_v63 = vld [vmem:[%s1856_s2 + $0x74] ss:$8 sps:$4 sm:$0xff]  }
 0x15c   : > { %v792_v5 = vpack.c.bf16 %v742_v1, %v740_v0 }
 0x15d   : > { %v793_v6 = vpack.c.bf16 %v743_v4, %v741_v3 }
 0x15f   : > { %v627_v7 = vpop.f32.mrb[28].mxu0  ;;  %920 = vmatprep.subr.bf16.mxu1 %v793_v6 }
 0x160   : > { %v629_v8 = vpop.f32.mrb[29].mxu0  ;;  %921 = vmatpush1.bf16.msra.mxu1 %v792_v5  ;;  %v744_v10 = vmax.f32 %v627_v7, 0.0 }
 0x161   : > { %v631_v9 = vpop.f32.mrb[30].mxu0  ;;  %v745_v13 = vmax.f32 %v629_v8, 0.0 }
 0x162   : > { %v746_v11 = vmax.f32 %v631_v9, 0.0  ;;  %v633_v12 = vpop.f32.mrb[31].mxu0 }
 0x163   : > { %v747_v14 = vmax.f32 %v633_v12, 0.0 }
 0x164   : > { %v794_v17 = vpack.c.bf16 %v746_v11, %v744_v10 }
 0x165   : > { %v795_v19 = vpack.c.bf16 %v747_v14, %v745_v13 }
 0x167   : > { %v637_v22 = vpop.f32.mrb[32].mxu0  ;;  %922 = vmatprep.subr.bf16.mxu1 %v795_v19 }
 0x168   : > { %v639_v23 = vpop.f32.mrb[33].mxu0  ;;  %923 = vmatpush1.bf16.msra.mxu1 %v794_v17  ;;  %v748_v25 = vmax.f32 %v637_v22, 0.0 }
 0x169   : > { %v641_v24 = vpop.f32.mrb[34].mxu0  ;;  %v749_v30 = vmax.f32 %v639_v23, 0.0 }
 0x16a   : > { %v750_v26 = vmax.f32 %v641_v24, 0.0  ;;  %v643_v27 = vpop.f32.mrb[35].mxu0 }
 0x16b   : > { %v751_v31 = vmax.f32 %v643_v27, 0.0 }
 0x16c   : > { %v796_v32 = vpack.c.bf16 %v750_v26, %v748_v25 }
 0x16d   : > { %v797_v33 = vpack.c.bf16 %v751_v31, %v749_v30 }
 0x16f   : > { %v647_v36 = vpop.f32.mrb[36].mxu0  ;;  %924 = vmatprep.subr.bf16.mxu1 %v797_v33 }
 0x170   : > { %v649_v37 = vpop.f32.mrb[37].mxu0  ;;  %925 = vmatpush1.bf16.msra.mxu1 %v796_v32  ;;  %v752_v39 = vmax.f32 %v647_v36, 0.0 }
 0x171   : > { %v651_v38 = vpop.f32.mrb[38].mxu0  ;;  %v753_v44 = vmax.f32 %v649_v37, 0.0 }
 0x172   : > { %v754_v40 = vmax.f32 %v651_v38, 0.0  ;;  %v653_v41 = vpop.f32.mrb[39].mxu0 }
 0x173   : > { %v755_v45 = vmax.f32 %v653_v41, 0.0 }
 0x174   : > { %v798_v46 = vpack.c.bf16 %v754_v40, %v752_v39 }
 0x175   : > { %v799_v47 = vpack.c.bf16 %v755_v45, %v753_v44 }
 0x177   : > { %v657_v50 = vpop.f32.mrb[40].mxu0  ;;  %926 = vmatprep.subr.bf16.mxu1 %v799_v47 }
 0x178   : > { %v659_v51 = vpop.f32.mrb[41].mxu0  ;;  %927 = vmatpush1.bf16.msra.mxu1 %v798_v46  ;;  %v756_v53 = vmax.f32 %v657_v50, 0.0  ;;  %v1476_v50 = vld [vmem:[%s1856_s2] ss:$8 sps:$4 sm:$0xff]  }
 0x179   : > { %v661_v52 = vpop.f32.mrb[42].mxu0  ;;  %v757_v58 = vmax.f32 %v659_v51, 0.0  ;;  %v1479_v51 = vld [vmem:[%s1856_s2 + $0x14] ss:$8 sps:$4 sm:$0xff]  }
 0x17a   : > { %v758_v54 = vmax.f32 %v661_v52, 0.0  ;;  %v663_v55 = vpop.f32.mrb[43].mxu0  ;;  %v1481_v52 = vld [vmem:[%s1856_s2 + $0x10] ss:$8 sps:$4 sm:$0xff]  }
 0x17b   : > { %v759_v59 = vmax.f32 %v663_v55, 0.0  ;;  %v1485_v55 = vld [vmem:[%s1856_s2 + $0x34] ss:$8 sps:$4 sm:$0xff]  }
 0x17c   : > { %v800_v60 = vpack.c.bf16 %v758_v54, %v756_v53  ;;  %v1482_v53 = vld [vmem:[%s1856_s2 + $0x24] ss:$8 sps:$4 sm:$0xff]   ;;  %v1484_v54 = vld [vmem:[%s1856_s2 + $0x20] ss:$8 sps:$4 sm:$0xff]  }
 0x17d   : > { %v801_v61 = vpack.c.bf16 %v759_v59, %v757_v58  ;;  %v1490_v58 = vld [vmem:[%s1856_s2 + $0x40] ss:$8 sps:$4 sm:$0xff]   ;;  %v1491_v59 = vld [vmem:[%s1856_s2 + $0x54] ss:$8 sps:$4 sm:$0xff]  }
 0x17f   : > { %v667_v0 = vpop.f32.mrb[44].mxu0  ;;  %928 = vmatprep.subr.bf16.mxu1 %v801_v61  ;;  %v1494_v61 = vld [vmem:[%s1856_s2 + $0x64] ss:$8 sps:$4 sm:$0xff]  }
 0x180   : > { %v669_v1 = vpop.f32.mrb[45].mxu0  ;;  %929 = vmatpush1.bf16.msra.mxu1 %v800_v60  ;;  %v760_v3 = vmax.f32 %v667_v0, 0.0  ;;  %v1493_v60 = vld [vmem:[%s1856_s2 + $0x50] ss:$8 sps:$4 sm:$0xff]  }
 0x181   : > { %v671_v2 = vpop.f32.mrb[46].mxu0  ;;  %v761_v6 = vmax.f32 %v669_v1, 0.0  ;;  %v1499_v0 = vld [vmem:[%s1856_s2 + $0x70] ss:$8 sps:$4 sm:$0xff]  }
 0x182   : > { %v762_v4 = vmax.f32 %v671_v2, 0.0  ;;  %v673_v5 = vpop.f32.mrb[47].mxu0 }
 0x183   : > { %v763_v7 = vmax.f32 %v673_v5, 0.0 }
 0x184   : > { %v802_v8 = vpack.c.bf16 %v762_v4, %v760_v3 }
 0x185   : > { %v803_v9 = vpack.c.bf16 %v763_v7, %v761_v6 }
 0x187   : > { %v677_v10 = vpop.f32.mrb[48].mxu0  ;;  %930 = vmatprep.subr.bf16.mxu1 %v803_v9 }
 0x188   : > { %v679_v11 = vpop.f32.mrb[49].mxu0  ;;  %931 = vmatpush1.bf16.msra.mxu1 %v802_v8  ;;  %v764_v13 = vmax.f32 %v677_v10, 0.0 }
 0x189   : > { %v681_v12 = vpop.f32.mrb[50].mxu0  ;;  %v765_v16 = vmax.f32 %v679_v11, 0.0 }
 0x18a   : > { %v766_v14 = vmax.f32 %v681_v12, 0.0  ;;  %v683_v15 = vpop.f32.mrb[51].mxu0 }
 0x18b   : > { %v767_v17 = vmax.f32 %v683_v15, 0.0 }
 0x18c   : > { %v804_v18 = vpack.c.bf16 %v766_v14, %v764_v13 }
 0x18d   : > { %v805_v19 = vpack.c.bf16 %v767_v17, %v765_v16 }
 0x18f   : > { %v687_v20 = vpop.f32.mrb[52].mxu0  ;;  %932 = vmatprep.subr.bf16.mxu1 %v805_v19 }
 0x190   : > { %v689_v21 = vpop.f32.mrb[53].mxu0  ;;  %933 = vmatpush1.bf16.msra.mxu1 %v804_v18  ;;  %v768_v23 = vmax.f32 %v687_v20, 0.0 }
 0x191   : > { %v691_v22 = vpop.f32.mrb[54].mxu0  ;;  %v769_v26 = vmax.f32 %v689_v21, 0.0 }
 0x192   : > { %v770_v24 = vmax.f32 %v691_v22, 0.0  ;;  %v693_v25 = vpop.f32.mrb[55].mxu0 }
 0x193   : > { %v771_v27 = vmax.f32 %v693_v25, 0.0 }
 0x194   : > { %v806_v28 = vpack.c.bf16 %v770_v24, %v768_v23 }
 0x195   : > { %v807_v29 = vpack.c.bf16 %v771_v27, %v769_v26 }
 0x197   : > { %v697_v30 = vpop.f32.mrb[56].mxu0  ;;  %934 = vmatprep.subr.bf16.mxu1 %v807_v29 }
 0x198   : > { %v699_v31 = vpop.f32.mrb[57].mxu0  ;;  %935 = vmatpush1.bf16.msra.mxu1 %v806_v28  ;;  %v772_v33 = vmax.f32 %v697_v30, 0.0 }
 0x199   : > { %v701_v32 = vpop.f32.mrb[58].mxu0  ;;  %v773_v36 = vmax.f32 %v699_v31, 0.0 }
 0x19a   : > { %v774_v34 = vmax.f32 %v701_v32, 0.0  ;;  %v703_v35 = vpop.f32.mrb[59].mxu0 }
 0x19b   : > { %v775_v37 = vmax.f32 %v703_v35, 0.0 }
 0x19c   : > { %v808_v38 = vpack.c.bf16 %v774_v34, %v772_v33 }
 0x19d   : > { %v809_v39 = vpack.c.bf16 %v775_v37, %v773_v36 }
 0x19f   : > { %v707_v40 = vpop.f32.mrb[60].mxu0  ;;  %936 = vmatprep.subr.bf16.mxu1 %v809_v39 }
 0x1a0   : > { %v709_v41 = vpop.f32.mrb[61].mxu0  ;;  %937 = vmatpush1.bf16.msra.mxu1 %v808_v38  ;;  %v776_v43 = vmax.f32 %v707_v40, 0.0 }
 0x1a1   : > { %v711_v42 = vpop.f32.mrb[62].mxu0  ;;  %v777_v46 = vmax.f32 %v709_v41, 0.0 }
 0x1a2   : > { %v778_v44 = vmax.f32 %v711_v42, 0.0  ;;  %v713_v45 = vpop.f32.mrb[63].mxu0 }
 0x1a3   : > { %v779_v47 = vmax.f32 %v713_v45, 0.0 }
 0x1a4   : > { %v810_v48 = vpack.c.bf16 %v778_v44, %v776_v43 }
 0x1a5   : > { %v811_v49 = vpack.c.bf16 %v779_v47, %v777_v46 }
 0x1a7   : > { %938 = vmatprep.subr.bf16.mxu1 %v811_v49 }
 0x1a8   : > { %939 = vmatpush1.bf16.msra.mxu1 %v810_v48 }
 0x1ab   : > { %941 = vmatmul.mubr.bf16.vlgmr.msra.gmra.mrb[0].mxu1 %v1476_v50 }
 0x1ac   : > { %950 = vmatprep.mubr.bf16.mxu1 %v1479_v51 }
 0x1b3   : > { %951 = vmatmul.mubr.bf16.gmra.mrb[4].mxu1 %v1481_v52 }
 0x1b4   : > { %960 = vmatprep.mubr.bf16.mxu1 %v1482_v53 }
 0x1b6   : > { %v1072_v1 = vpop.permute.xlu0 %1071 }
 0x1b7   : > { %v1082_v15 = vpop.permute.xlu1 %1081 }
 0x1ba   : > { %v1077_v7 = vpop.permute.xlu0 %1076 }
 0x1bb   : > { %961 = vmatmul.mubr.bf16.gmra.mrb[8].mxu1 %v1484_v54  ;;  %v1087_v26 = vpop.permute.xlu1 %1086 }
 0x1bc   : > { %970 = vmatprep.mubr.bf16.mxu1 %v1485_v55 }
 0x1be   : > { %v1092_v38 = vpop.permute.xlu0 %1091 }
 0x1c0   : > { %v1097_v44 = vpop.permute.xlu1 %1096 }
 0x1c3   : > { %971 = vmatmul.mubr.bf16.gmra.mrb[12].mxu1 %v1487_v56 }
 0x1c4   : > { %980 = vmatprep.mubr.bf16.mxu1 %v1488_v57  ;;  %v1102_v56 = vpop.permute.xlu0 %1101 }
 0x1cb   : > { %981 = vmatmul.mubr.bf16.gmra.mrb[16].mxu1 %v1490_v58 }
 0x1cc   : > { %990 = vmatprep.mubr.bf16.mxu1 %v1491_v59 }
 0x1d3   : > { %991 = vmatmul.mubr.bf16.gmra.mrb[20].mxu1 %v1493_v60 }
 0x1d4   : > { %1000 = vmatprep.mubr.bf16.mxu1 %v1494_v61 }
 0x1db   : > { %1001 = vmatmul.mubr.bf16.gmra.mrb[24].mxu1 %v1496_v62  ;;  %v1107_v62 = vpop.permute.xlu1 %1106 }
 0x1dc   : > { %1010 = vmatprep.mubr.bf16.mxu1 %v1497_v63 }
 0x1e3   : > { %1011 = vmatmul.mubr.bf16.gmra.mrb[28].mxu1 %v1499_v0 }
 0x27e   : > { %v942_v2 = vpop.f32.mrb[0].mxu1 }
 0x27f   : > { %v1021_v3 = vmax.f32 %v942_v2, 0.0  ;;  %v944_v4 = vpop.f32.mrb[1].mxu1 }
 0x280   : > { %v1022_v5 = vmax.f32 %v944_v4, 0.0  ;;  %v946_v6 = vpop.f32.mrb[2].mxu1 }
 0x281   : > { %v1023_v8 = vmax.f32 %v946_v6, 0.0  ;;  %v948_v9 = vpop.f32.mrb[3].mxu1  ;;  %v1149_v11 = vmul.f32 %v1072_v1, %v1021_v3 }
 0x282   : > { %v1024_v10 = vmax.f32 %v948_v9, 0.0  ;;  %v1150_v13 = vmul.f32 %v1072_v1, %v1022_v5 }
 0x283   : > { %v1151_v12 = vmul.f32 %v1077_v7, %v1023_v8 }
 0x284   : > { %v1152_v14 = vmul.f32 %v1077_v7, %v1024_v10  ;;  %v1112_v10 = vpop.permute.xlu0 %1111 }
 0x285   : > { %v1181_v16 = vadd.f32 %v1151_v12, %v1149_v11 }
 0x286   : > { %v1202_v17 = vadd.f32 %v1152_v14, %v1150_v13  ;;  %v952_v18 = vpop.f32.mrb[4].mxu1 }
 0x287   : > { %v1025_v19 = vmax.f32 %v952_v18, 0.0  ;;  %v954_v20 = vpop.f32.mrb[5].mxu1 }
 0x288   : > { %v1026_v21 = vmax.f32 %v954_v20, 0.0  ;;  %v956_v22 = vpop.f32.mrb[6].mxu1 }
 0x289   : > { %v1153_v23 = vmul.f32 %v1082_v15, %v1025_v19  ;;  %v1027_v24 = vmax.f32 %v956_v22, 0.0  ;;  %v958_v25 = vpop.f32.mrb[7].mxu1 }
 0x28a   : > { %v1154_v27 = vmul.f32 %v1082_v15, %v1026_v21  ;;  %v1028_v28 = vmax.f32 %v958_v25, 0.0 }
 0x28b   : > { %v1182_v29 = vadd.f32 %v1181_v16, %v1153_v23  ;;  %v1155_v30 = vmul.f32 %v1087_v26, %v1027_v24  ;;  %v1117_v16 = vpop.permute.xlu1 %1116 }
 0x28c   : > { %v1203_v31 = vadd.f32 %v1202_v17, %v1154_v27  ;;  %v1156_v32 = vmul.f32 %v1087_v26, %v1028_v28  ;;  %v1122_v28 = vpop.permute.xlu0 %1121 }
 0x28d   : > { %v1183_v33 = vadd.f32 %v1182_v29, %v1155_v30 }
 0x28e   : > { %v1204_v34 = vadd.f32 %v1203_v31, %v1156_v32  ;;  %v962_v35 = vpop.f32.mrb[8].mxu1 }
 0x28f   : > { %v1029_v36 = vmax.f32 %v962_v35, 0.0  ;;  %v964_v37 = vpop.f32.mrb[9].mxu1 }
 0x290   : > { %v1030_v39 = vmax.f32 %v964_v37, 0.0  ;;  %v966_v40 = vpop.f32.mrb[10].mxu1 }
 0x291   : > { %v1157_v41 = vmul.f32 %v1092_v38, %v1029_v36  ;;  %v1031_v42 = vmax.f32 %v966_v40, 0.0  ;;  %v968_v43 = vpop.f32.mrb[11].mxu1 }
 0x292   : > { %v1158_v45 = vmul.f32 %v1092_v38, %v1030_v39  ;;  %v1032_v46 = vmax.f32 %v968_v43, 0.0 }
 0x293   : > { %v1184_v47 = vadd.f32 %v1183_v33, %v1157_v41  ;;  %v1159_v48 = vmul.f32 %v1097_v44, %v1031_v42 }
 0x294   : > { %v1205_v49 = vadd.f32 %v1204_v34, %v1158_v45  ;;  %v1160_v50 = vmul.f32 %v1097_v44, %v1032_v46  ;;  %v1127_v34 = vpop.permute.xlu1 %1126  ;;  %v1132_v46 = vpop.permute.xlu0 %1131 }
 0x295   : > { %v1185_v51 = vadd.f32 %v1184_v47, %v1159_v48 }
 0x296   : > { %v1206_v52 = vadd.f32 %v1205_v49, %v1160_v50  ;;  %v972_v53 = vpop.f32.mrb[12].mxu1 }
 0x297   : > { %v1033_v54 = vmax.f32 %v972_v53, 0.0  ;;  %v974_v55 = vpop.f32.mrb[13].mxu1 }
 0x298   : > { %v1034_v57 = vmax.f32 %v974_v55, 0.0  ;;  %v976_v58 = vpop.f32.mrb[14].mxu1 }
 0x299   : > { %v1161_v59 = vmul.f32 %v1102_v56, %v1033_v54  ;;  %v1035_v60 = vmax.f32 %v976_v58, 0.0  ;;  %v978_v61 = vpop.f32.mrb[15].mxu1 }
 0x29a   : > { %v1162_v63 = vmul.f32 %v1102_v56, %v1034_v57  ;;  %v1036_v0 = vmax.f32 %v978_v61, 0.0 }
 0x29b   : > { %v1186_v1 = vadd.f32 %v1185_v51, %v1161_v59  ;;  %v1163_v2 = vmul.f32 %v1107_v62, %v1035_v60 }
 0x29c   : > { %v1207_v3 = vadd.f32 %v1206_v52, %v1162_v63  ;;  %v1164_v4 = vmul.f32 %v1107_v62, %v1036_v0  ;;  %v1137_v52 = vpop.permute.xlu1 %1136  ;;  %v1142_v0 = vpop.permute.xlu0 %1141 }
 0x29d   : > { %v1187_v5 = vadd.f32 %v1186_v1, %v1163_v2 }
 0x29e   : > { %v1208_v6 = vadd.f32 %v1207_v3, %v1164_v4  ;;  %v982_v7 = vpop.f32.mrb[16].mxu1 }
 0x29f   : > { %v1037_v8 = vmax.f32 %v982_v7, 0.0  ;;  %v984_v9 = vpop.f32.mrb[17].mxu1 }
 0x2a0   : > { %v1038_v11 = vmax.f32 %v984_v9, 0.0  ;;  %v986_v12 = vpop.f32.mrb[18].mxu1 }
 0x2a1   : > { %v1165_v13 = vmul.f32 %v1112_v10, %v1037_v8  ;;  %v1039_v14 = vmax.f32 %v986_v12, 0.0  ;;  %v988_v15 = vpop.f32.mrb[19].mxu1 }
 0x2a2   : > { %v1166_v17 = vmul.f32 %v1112_v10, %v1038_v11  ;;  %v1040_v18 = vmax.f32 %v988_v15, 0.0 }
 0x2a3   : > { %v1188_v19 = vadd.f32 %v1187_v5, %v1165_v13  ;;  %v1167_v20 = vmul.f32 %v1117_v16, %v1039_v14 }
 0x2a4   : > { %v1209_v21 = vadd.f32 %v1208_v6, %v1166_v17  ;;  %v1168_v22 = vmul.f32 %v1117_v16, %v1040_v18  ;;  %v1147_v6 = vpop.permute.xlu1 %1146 }
 0x2a5   : > { %v1189_v23 = vadd.f32 %v1188_v19, %v1167_v20 }
 0x2a6   : > { %v1210_v24 = vadd.f32 %v1209_v21, %v1168_v22  ;;  %v992_v25 = vpop.f32.mrb[20].mxu1 }
 0x2a7   : > { %v1041_v26 = vmax.f32 %v992_v25, 0.0  ;;  %v994_v27 = vpop.f32.mrb[21].mxu1 }
 0x2a8   : > { %v1042_v29 = vmax.f32 %v994_v27, 0.0  ;;  %v996_v30 = vpop.f32.mrb[22].mxu1 }
 0x2a9   : > { %v1169_v31 = vmul.f32 %v1122_v28, %v1041_v26  ;;  %v1043_v32 = vmax.f32 %v996_v30, 0.0  ;;  %v998_v33 = vpop.f32.mrb[23].mxu1 }
 0x2aa   : > { %v1170_v35 = vmul.f32 %v1122_v28, %v1042_v29  ;;  %v1044_v36 = vmax.f32 %v998_v33, 0.0  ;;  %v1533_v33 = vmov 1966171168  }
 0x2ab   : > { %v1190_v37 = vadd.f32 %v1189_v23, %v1169_v31  ;;  %v1171_v38 = vmul.f32 %v1127_v34, %v1043_v32 }
 0x2ac   : > { %v1211_v39 = vadd.f32 %v1210_v24, %v1170_v35  ;;  %v1172_v40 = vmul.f32 %v1127_v34, %v1044_v36  ;;  %v1239_v34 = vunpack.c.l.s4 %v1533_v33  ;;  %v1241_v35 = vlaneseq }
 0x2ad   : > { %v1191_v41 = vadd.f32 %v1190_v37, %v1171_v38 }
 0x2ae   : > { %v1212_v42 = vadd.f32 %v1211_v39, %v1172_v40  ;;  %v1002_v43 = vpop.f32.mrb[24].mxu1  ;;  %v1240_v36 = vunpack.c.0.s8 %v1239_v34  ;;  %v1242_v37 = vshrl.u32 %v1241_v35, 7  ;;  %vm1255_vm0 = vcmp.lt.s32.totalorder %v1241_v35, 256 }
 0x2af   : > { %v1045_v44 = vmax.f32 %v1002_v43, 0.0  ;;  %v1004_v45 = vpop.f32.mrb[25].mxu1 }
 0x2b0   : > { %v1046_v47 = vmax.f32 %v1004_v45, 0.0  ;;  %v1006_v48 = vpop.f32.mrb[26].mxu1  ;;  %v1243_v39 = vsub.s32 %v1240_v36, %v1242_v37 }
 0x2b1   : > { %v1173_v49 = vmul.f32 %v1132_v46, %v1045_v44  ;;  %v1047_v50 = vmax.f32 %v1006_v48, 0.0  ;;  %v1008_v51 = vpop.f32.mrb[27].mxu1 }
 0x2b2   : > { %v1174_v53 = vmul.f32 %v1132_v46, %v1046_v47  ;;  %v1048_v54 = vmax.f32 %v1008_v51, 0.0 }
 0x2b3   : > { %v1192_v55 = vadd.f32 %v1191_v41, %v1173_v49  ;;  %v1175_v56 = vmul.f32 %v1137_v52, %v1047_v50 }
 0x2b4   : > { %v1213_v57 = vadd.f32 %v1212_v42, %v1174_v53  ;;  %v1176_v58 = vmul.f32 %v1137_v52, %v1048_v54 }
 0x2b5   : > { %v1193_v59 = vadd.f32 %v1192_v55, %v1175_v56 }
 0x2b6   : > { %v1214_v60 = vadd.f32 %v1213_v57, %v1176_v58  ;;  %v1012_v61 = vpop.f32.mrb[28].mxu1 }
 0x2b7   : > { %v1049_v62 = vmax.f32 %v1012_v61, 0.0  ;;  %v1014_v63 = vpop.f32.mrb[29].mxu1 }
 0x2b8   : > { %v1050_v1 = vmax.f32 %v1014_v63, 0.0  ;;  %v1016_v2 = vpop.f32.mrb[30].mxu1 }
 0x2b9   : > { %v1177_v3 = vmul.f32 %v1142_v0, %v1049_v62  ;;  %v1051_v4 = vmax.f32 %v1016_v2, 0.0  ;;  %v1018_v5 = vpop.f32.mrb[31].mxu1 }
 0x2ba   : > { %v1178_v7 = vmul.f32 %v1142_v0, %v1050_v1  ;;  %v1052_v8 = vmax.f32 %v1018_v5, 0.0 }
 0x2bb   : > { %v1194_v9 = vadd.f32 %v1193_v59, %v1177_v3  ;;  %v1179_v10 = vmul.f32 %v1147_v6, %v1051_v4 }
 0x2bc   : > { %v1215_v11 = vadd.f32 %v1214_v60, %v1178_v7  ;;  %v1180_v12 = vmul.f32 %v1147_v6, %v1052_v8 }
 0x2bd   : > { %v1195_v13 = vadd.f32 %v1194_v9, %v1179_v10 }
 0x2be   : > { %v1216_v14 = vadd.f32 %v1215_v11, %v1180_v12 }
 0x2bf   : > { %v1196_v15 = vrot.slane %v1195_v13, 4 }
 0x2c0   : > { %v1217_v16 = vrot.slane %v1216_v14, 4 }
 0x2c1   : > { %v1197_v17 = vadd.f32 %v1196_v15, %v1195_v13 }
 0x2c2   : > { %v1218_v18 = vadd.f32 %v1217_v16, %v1216_v14 }
 0x2c3   : > { %v1198_v19 = vrot.slane %v1197_v17, 2 }
 0x2c4   : > { %v1219_v20 = vrot.slane %v1218_v18, 2 }
 0x2c5   : > { %v1199_v21 = vadd.f32 %v1198_v19, %v1197_v17 }
 0x2c6   : > { %v1220_v22 = vadd.f32 %v1219_v20, %v1218_v18 }
 0x2c7   : > { %v1200_v23 = vrot.slane %v1199_v21, 1 }
 0x2c8   : > { %v1221_v24 = vrot.slane %v1220_v22, 1 }
 0x2c9   : > { %v1201_v25 = vadd.f32 %v1200_v23, %v1199_v21 }
 0x2ca   : > { %v1222_v26 = vadd.f32 %v1221_v24, %v1220_v22 }
 0x2cb   : > { %v1395_v27 = vmul.f32 -1.442695, %v1201_v25 }
 0x2cc   : > { %v1396_v28 = vmul.f32 -1.442695, %v1222_v26 }
 0x2cd   : > { %1500 = vpow2.f32 %v1395_v27 }
 0x2ce   : > { %1502 = vpow2.f32 %v1396_v28 }
 0x2d7   : > { %v1501_v29 = vpop.eup %1500 }
 0x2d8   : > { %v1503_v30 = vpop.eup %1502  ;;  %v1229_v31 = vadd.f32 1.0, %v1501_v29 }
 0x2d9   : > { %v1230_v32 = vadd.f32 1.0, %v1503_v30 }
 0x2da   : > { %1504 = vrcp.f32 %v1229_v31 }
 0x2db   : > { %1506 = vrcp.f32 %v1230_v32 }
 0x2e4   : > { %v1505_v38 = vpop.eup %1504 }
 0x2e5   : > { %v1507_v40 = vpop.eup %1506 }
 0x2e6   : > { %v1237_v41 = vcombine.low %v1505_v38, %v1507_v40 }
 0x2e8   : > { %v1244_v42 = vrot.slane %v1237_v41, %v1243_v39 }
 0x2ea   : > { %v1251_v43 = vrot.slane %v1244_v42, %v1243_v39 }
 0x2ec   : > { %1257 = vst.msk [vmem:[%s233_s22] sm:$0x3] %vm1255_vm0, %v1251_v43 }
 0x2ed PF: > { %s14_s17 = sadd.s32 1, %s1530_s17   ;;  %s1859_s15 = smov %s1526_s16 }
 0x2ee   : > { %p11_p5 = scmp.ge.s32.totalorder %s14_s17, 4   ;;  %s1860_s16 = smov %s1862_s18 }
 0x2f0   :  { %13 = sbr.rel (!%p11_p5) target bundleno = 2 (0x2), region = 66 }

</bundles_post_ra>
